<compile_context>
chip_gen: v7x
topology: tpu7x:2x2x1
jax: 0.10.0
libtpu: 0.0.40
codegen_flags: <defaults>
</compile_context>

<pallas_src>
import functools

import jax
import jax.numpy as jnp
from jax import lax
from jax.experimental import pallas as pl
from jax.experimental.pallas import tpu as pltpu


def convlayer_kernel(x_ref, s1_ref, b1_ref, w1s_ref, b2_ref, w2b_ref, mw_ref,
                     o_ref, z_ref, *, width):
    """One batch element, channel-major flattened-spatial layout.

    x_ref  : (Cin,  HW)   f32   input image, channels x flattened spatial
    s1,b1  : (Cin,  1)    f32   folded BN1 scale / bias
    w1s    : (Cmid, Cin)  bf16  1x1 conv weight with BN2 scale folded in
    b2     : (Cmid, 1)    f32   folded BN2 bias
    w2b    : (9*Cg, Cmid) bf16  3x3 conv weight, all 9 taps stacked (tap-major rows)
    mw     : (2, HW)      f32   column-validity masks (row 0: dx=0, row 1: dx=2)
    o_ref  : (Cg,  HW)    f32   output block (also used as the f32 accumulator)
    z_ref  : (9*Cg, HW)   f32   VMEM scratch holding the fused per-tap matmul result
    """
    W = width
    cg = o_ref.shape[0]

    # BN1 + ReLU in f32 (VPU).
    h = jnp.maximum(x_ref[...] * s1_ref[...] + b1_ref[...], 0.0)          # (Cin, HW)

    # 1x1 conv (+ folded BN2 scale): one MXU matmul, bf16 operands / f32 accumulation.
    y = jnp.dot(w1s_ref[...], h.astype(jnp.bfloat16),
                preferred_element_type=jnp.float32)                        # (Cmid, HW)
    y = jnp.maximum(y + b2_ref[...], 0.0)                                  # BN2 bias + ReLU

    # 3x3 conv: all nine taps fused into one wide matmul -> (9*Cg, HW) VMEM scratch.
    z_ref[...] = jnp.dot(w2b_ref[...], y.astype(jnp.bfloat16),
                         preferred_element_type=jnp.float32)

    mw = mw_ref[...]                                                       # (2, HW)

    # Center tap (dy=1, dx=1, flat offset 0): no shift, no mask; initializes the output.
    o_ref[...] = z_ref[4 * cg:5 * cg, :]

    # Remaining 8 taps: static lane shift with zero fill + column-validity mask.
    # out[g, p] += Z[t*Cg + g, p + off_t]  where off_t = (dy-1)*W + (dx-1); positions whose
    # shifted flat index falls outside [0, HW) are zero-filled (handles the top/bottom rows);
    # positions whose source column w+dx-1 is out of range are zeroed by the mask.
    for t in (0, 1, 2, 3, 5, 6, 7, 8):
        dy, dx = divmod(t, 3)
        off = (dy - 1) * W + (dx - 1)
        chunk = z_ref[t * cg:(t + 1) * cg, :]                              # (Cg, HW)
        fill = jnp.zeros((cg, abs(off)), jnp.float32)
        if off > 0:
            shifted = jnp.concatenate([chunk[:, off:], fill], axis=1)
        else:
            shifted = jnp.concatenate([fill, chunk[:, :off]], axis=1)
        if dx == 0:                      # source column w-1 must exist
            shifted = shifted * mw[0:1, :]
        elif dx == 2:                    # source column w+1 must exist
            shifted = shifted * mw[1:2, :]
        o_ref[...] += shifted


def convlayer_forward(x_nchw, params, eps=1e-5):
    """x_nchw: (N, Cin, H, W) float32 (PyTorch layout). Returns (N, Cin+Cg, H, W)."""
    N, Cin, H, W = x_nchw.shape
    Cmid = params["conv1_w"].shape[0]
    Cg = params["conv2_w"].shape[0]
    HW = H * W

    # Fold eval-mode BatchNorm into per-channel scale/bias.
    s1 = params["bn1_gamma"] / jnp.sqrt(params["bn1_var"] + eps)
    b1 = params["bn1_beta"] - params["bn1_mean"] * s1
    s2 = params["bn2_gamma"] / jnp.sqrt(params["bn2_var"] + eps)
    b2 = params["bn2_beta"] - params["bn2_mean"] * s2

    # 1x1 conv weight as (Cmid, Cin), BN2 scale folded in; bf16 for the MXU.
    w1s = (params["conv1_w"].reshape(Cmid, Cin) * s2[:, None]).astype(jnp.bfloat16)

    # 3x3 conv weight: (Cg, Cmid, 3, 3) -> (9*Cg, Cmid), rows grouped by tap t = dy*3 + dx.
    w2b = jnp.transpose(params["conv2_w"], (2, 3, 0, 1)).reshape(9 * Cg, Cmid)
    w2b = w2b.astype(jnp.bfloat16)

    # Column-validity masks (indexed by output flat position p; column = p mod W).
    col = jnp.arange(HW, dtype=jnp.int32) % W
    mw = jnp.stack([(col >= 1).astype(jnp.float32),          # dx = 0 : needs w-1 >= 0
                    (col <= W - 2).astype(jnp.float32)],     # dx = 2 : needs w+1 <  W
                   axis=0)                                    # (2, HW)

    x_flat = x_nchw.reshape(N, Cin, HW)    # NCHW with H,W flattened: free, no transpose.

    kernel = functools.partial(convlayer_kernel, width=W)
    out_flat = pl.pallas_call(
        kernel,
        out_shape=jax.ShapeDtypeStruct((N, Cg, HW), jnp.float32),
        grid_spec=pltpu.PrefetchScalarGridSpec(
            num_scalar_prefetch=0,
            grid=(N,),
            in_specs=[
                pl.BlockSpec((None, Cin, HW), lambda n: (n, 0, 0)),
                pl.BlockSpec((Cin, 1), lambda n: (0, 0)),
                pl.BlockSpec((Cin, 1), lambda n: (0, 0)),
                pl.BlockSpec((Cmid, Cin), lambda n: (0, 0)),
                pl.BlockSpec((Cmid, 1), lambda n: (0, 0)),
                pl.BlockSpec((9 * Cg, Cmid), lambda n: (0, 0)),
                pl.BlockSpec((2, HW), lambda n: (0, 0)),
            ],
            out_specs=pl.BlockSpec((None, Cg, HW), lambda n: (n, 0, 0)),
            scratch_shapes=[pltpu.VMEM((9 * Cg, HW), jnp.float32)],
        ),
        compiler_params=pltpu.CompilerParams(dimension_semantics=("parallel",)),
    )(x_flat, s1[:, None], b1[:, None], w1s, b2[:, None], w2b, mw)

    out_nchw = out_flat.reshape(N, Cg, H, W)
    return jnp.concatenate([x_nchw, out_nchw], axis=1)        # torch.cat dim=1


def convlayer_reference(x, p, eps=1e-5):
    """Pure-JAX reference (NCHW, f32), eval-mode BN, for correctness checking."""
    def bn(z, g, b, m, v):
        return (z - m[None, :, None, None]) / jnp.sqrt(v[None, :, None, None] + eps) \
               * g[None, :, None, None] + b[None, :, None, None]
    h = jnp.maximum(bn(x, p["bn1_gamma"], p["bn1_beta"], p["bn1_mean"], p["bn1_var"]), 0.0)
    h = lax.conv_general_dilated(h, p["conv1_w"], (1, 1), "VALID",
                                 dimension_numbers=("NCHW", "OIHW", "NCHW"))
    h = jnp.maximum(bn(h, p["bn2_gamma"], p["bn2_beta"], p["bn2_mean"], p["bn2_var"]), 0.0)
    h = lax.conv_general_dilated(h, p["conv2_w"], (1, 1), [(1, 1), (1, 1)],
                                 dimension_numbers=("NCHW", "OIHW", "NCHW"))
    return jnp.concatenate([x, h], axis=1)


def make_params(key, inchannels, growth_rate, bn_size=4):
    cmid = growth_rate * bn_size
    ks = jax.random.split(key, 10)
    u = lambda k, s: jax.random.uniform(k, s, jnp.float32, 0.5, 1.5)
    n = lambda k, s, sc=0.1: sc * jax.random.normal(k, s, jnp.float32)
    return {
        "bn1_gamma": u(ks[0], (inchannels,)),
        "bn1_beta":  n(ks[1], (inchannels,)),
        "bn1_mean":  n(ks[2], (inchannels,)),
        "bn1_var":   u(ks[3], (inchannels,)),
        "conv1_w":   n(ks[4], (cmid, inchannels, 1, 1)),
        "bn2_gamma": u(ks[5], (cmid,)),
        "bn2_beta":  n(ks[6], (cmid,)),
        "bn2_mean":  n(ks[7], (cmid,)),
        "bn2_var":   u(ks[8], (cmid,)),
        "conv2_w":   n(ks[9], (growth_rate, cmid, 3, 3)),
    }


if __name__ == "__main__":
    N, Cin, H, W = 2, 4, 16, 16
    growth_rate, bn_size = 8, 4

    key = jax.random.PRNGKey(0)
    k_params, k_x = jax.random.split(key)
    params = make_params(k_params, Cin, growth_rate, bn_size)
    x = jax.random.normal(k_x, (N, Cin, H, W), jnp.float32)

    out = convlayer_forward(x, params)
    out = jax.block_until_ready(out)

    ref = convlayer_reference(x, params)
    assert out.shape == (N, Cin + growth_rate, H, W), out.shape
    max_err = float(jnp.max(jnp.abs(out - ref)))
    # bf16 matmul operands with f32 accumulation -> loosened tolerance vs. pure-f32 reference.
    assert jnp.allclose(out, ref, atol=5e-2, rtol=5e-2), f"max abs err = {max_err}"

    print("KERNEL_OK")
</pallas_src>

<mosaic_0001>
module attributes {stable_mosaic.version = 11 : i64} {
  func.func @convlayer_kernel(%arg0: i32, %arg1: memref<1x4x256xf32, #tpu.memory_space<vmem>>, %arg2: memref<4x1xf32, #tpu.memory_space<vmem>>, %arg3: memref<4x1xf32, #tpu.memory_space<vmem>>, %arg4: memref<32x4xbf16, #tpu.memory_space<vmem>>, %arg5: memref<32x1xf32, #tpu.memory_space<vmem>>, %arg6: memref<72x32xbf16, #tpu.memory_space<vmem>>, %arg7: memref<2x256xf32, #tpu.memory_space<vmem>>, %arg8: memref<1x8x256xf32, #tpu.memory_space<vmem>>, %arg9: memref<72x256xf32, #tpu.memory_space<vmem>>) attributes {dimension_semantics = [#tpu.dimension_semantics<parallel>], iteration_bounds = array<i64: 2>, scalar_prefetch = 0 : i64, scratch_operands = 1 : i64, tpu.core_type = #tpu.core_type<tc>, window_params = [{transform_indices = @transform_0, window_bounds = array<i64: 1, 4, 256>}, {pipeline_mode = #tpu.pipeline_mode<synchronous>, transform_indices = @transform_1, window_bounds = array<i64: 4, 1>}, {pipeline_mode = #tpu.pipeline_mode<synchronous>, transform_indices = @transform_2, window_bounds = array<i64: 4, 1>}, {pipeline_mode = #tpu.pipeline_mode<synchronous>, transform_indices = @transform_3, window_bounds = array<i64: 32, 4>}, {pipeline_mode = #tpu.pipeline_mode<synchronous>, transform_indices = @transform_4, window_bounds = array<i64: 32, 1>}, {pipeline_mode = #tpu.pipeline_mode<synchronous>, transform_indices = @transform_5, window_bounds = array<i64: 72, 32>}, {pipeline_mode = #tpu.pipeline_mode<synchronous>, transform_indices = @transform_6, window_bounds = array<i64: 2, 256>}, {transform_indices = @transform_7, window_bounds = array<i64: 1, 8, 256>}]} {
    %c0 = arith.constant 0 : index
    %c0_0 = arith.constant 0 : index
    %c0_1 = arith.constant 0 : index
    %0 = vector.load %arg1[%c0, %c0_0, %c0_1] : memref<1x4x256xf32, #tpu.memory_space<vmem>>, vector<1x4x256xf32>
    %1 = vector.shape_cast %0 : vector<1x4x256xf32> to vector<4x256xf32>
    %c0_2 = arith.constant 0 : index
    %c0_3 = arith.constant 0 : index
    %2 = vector.load %arg2[%c0_2, %c0_3] : memref<4x1xf32, #tpu.memory_space<vmem>>, vector<4x1xf32>
    %3 = vector.broadcast %2 : vector<4x1xf32> to vector<4x256xf32>
    %4 = arith.mulf %1, %3 : vector<4x256xf32>
    %c0_4 = arith.constant 0 : index
    %c0_5 = arith.constant 0 : index
    %5 = vector.load %arg3[%c0_4, %c0_5] : memref<4x1xf32, #tpu.memory_space<vmem>>, vector<4x1xf32>
    %6 = vector.broadcast %5 : vector<4x1xf32> to vector<4x256xf32>
    %7 = arith.addf %4, %6 : vector<4x256xf32>
    %cst = arith.constant 0.000000e+00 : f32
    %8 = vector.broadcast %cst : f32 to vector<4x256xf32>
    %9 = arith.maximumf %7, %8 : vector<4x256xf32>
    %c0_6 = arith.constant 0 : index
    %c0_7 = arith.constant 0 : index
    %10 = vector.load %arg4[%c0_6, %c0_7] : memref<32x4xbf16, #tpu.memory_space<vmem>>, vector<32x4xbf16>
    %11 = arith.truncf %9 : vector<4x256xf32> to vector<4x256xbf16>
    %cst_8 = arith.constant dense<0.000000e+00> : vector<32x256xf32>
    %12 = tpu.matmul %10, %11, %cst_8 {dimension_numbers = #tpu.dot_dimension_numbers<[1], [0], [0], [1], [0, 0, 1, 1], [], []>} : vector<32x4xbf16>, vector<4x256xbf16>, vector<32x256xf32> -> vector<32x256xf32>
    %c0_9 = arith.constant 0 : index
    %c0_10 = arith.constant 0 : index
    %13 = vector.load %arg5[%c0_9, %c0_10] : memref<32x1xf32, #tpu.memory_space<vmem>>, vector<32x1xf32>
    %14 = vector.broadcast %13 : vector<32x1xf32> to vector<32x256xf32>
    %15 = arith.addf %12, %14 : vector<32x256xf32>
    %cst_11 = arith.constant 0.000000e+00 : f32
    %16 = vector.broadcast %cst_11 : f32 to vector<32x256xf32>
    %17 = arith.maximumf %15, %16 : vector<32x256xf32>
    %c0_12 = arith.constant 0 : index
    %c0_13 = arith.constant 0 : index
    %18 = vector.load %arg6[%c0_12, %c0_13] : memref<72x32xbf16, #tpu.memory_space<vmem>>, vector<72x32xbf16>
    %19 = arith.truncf %17 : vector<32x256xf32> to vector<32x256xbf16>
    %cst_14 = arith.constant dense<0.000000e+00> : vector<72x256xf32>
    %20 = tpu.matmul %18, %19, %cst_14 {dimension_numbers = #tpu.dot_dimension_numbers<[1], [0], [0], [1], [0, 0, 1, 1], [], []>} : vector<72x32xbf16>, vector<32x256xbf16>, vector<72x256xf32> -> vector<72x256xf32>
    %c0_15 = arith.constant 0 : index
    %c0_16 = arith.constant 0 : index
    %21 = vector.load %arg9[%c0_15, %c0_16] : memref<72x256xf32, #tpu.memory_space<vmem>>, vector<72x256xf32>
    tpu.vector_store %arg9[%c0_15, %c0_16], %20 {strides = array<i32>} : memref<72x256xf32, #tpu.memory_space<vmem>>, vector<72x256xf32>,
    %c0_17 = arith.constant 0 : index
    %c0_18 = arith.constant 0 : index
    %22 = vector.load %arg7[%c0_17, %c0_18] : memref<2x256xf32, #tpu.memory_space<vmem>>, vector<2x256xf32>
    %c32 = arith.constant 32 : index
    %c0_19 = arith.constant 0 : index
    %23 = vector.load %arg9[%c32, %c0_19] : memref<72x256xf32, #tpu.memory_space<vmem>>, vector<8x256xf32>
    %c0_20 = arith.constant 0 : index
    %c0_21 = arith.constant 0 : index
    %c0_22 = arith.constant 0 : index
    %24 = vector.load %arg8[%c0_20, %c0_21, %c0_22] : memref<1x8x256xf32, #tpu.memory_space<vmem>>, vector<1x8x256xf32>
    %25 = vector.shape_cast %24 : vector<1x8x256xf32> to vector<8x256xf32>
    %26 = vector.shape_cast %23 : vector<8x256xf32> to vector<1x8x256xf32>
    tpu.vector_store %arg8[%c0_20, %c0_21, %c0_22], %26 {strides = array<i32>} : memref<1x8x256xf32, #tpu.memory_space<vmem>>, vector<1x8x256xf32>,
    %c0_23 = arith.constant 0 : index
    %c0_24 = arith.constant 0 : index
    %27 = vector.load %arg9[%c0_23, %c0_24] : memref<72x256xf32, #tpu.memory_space<vmem>>, vector<8x256xf32>
    %cst_25 = arith.constant 0.000000e+00 : f32
    %28 = vector.broadcast %cst_25 : f32 to vector<8x17xf32>
    %29 = vector.extract_strided_slice %27 {offsets = [0, 0], sizes = [8, 239], strides = [1, 1]} : vector<8x256xf32> to vector<8x239xf32>
    %30 = tpu.concatenate %28, %29 in 1 : vector<8x17xf32>, vector<8x239xf32> -> vector<8x256xf32>
    %31 = vector.extract_strided_slice %22 {offsets = [0, 0], sizes = [1, 256], strides = [1, 1]} : vector<2x256xf32> to vector<1x256xf32>
    %32 = vector.broadcast %31 : vector<1x256xf32> to vector<8x256xf32>
    %33 = arith.mulf %30, %32 : vector<8x256xf32>
    %c0_26 = arith.constant 0 : index
    %c0_27 = arith.constant 0 : index
    %c0_28 = arith.constant 0 : index
    %34 = vector.load %arg8[%c0_26, %c0_27, %c0_28] : memref<1x8x256xf32, #tpu.memory_space<vmem>>, vector<1x8x256xf32>
    %35 = vector.shape_cast %34 : vector<1x8x256xf32> to vector<8x256xf32>
    %36 = arith.addf %35, %33 : vector<8x256xf32>
    %c0_29 = arith.constant 0 : index
    %c0_30 = arith.constant 0 : index
    %c0_31 = arith.constant 0 : index
    %37 = vector.load %arg8[%c0_29, %c0_30, %c0_31] : memref<1x8x256xf32, #tpu.memory_space<vmem>>, vector<1x8x256xf32>
    %38 = vector.shape_cast %37 : vector<1x8x256xf32> to vector<8x256xf32>
    %39 = vector.shape_cast %36 : vector<8x256xf32> to vector<1x8x256xf32>
    tpu.vector_store %arg8[%c0_29, %c0_30, %c0_31], %39 {strides = array<i32>} : memref<1x8x256xf32, #tpu.memory_space<vmem>>, vector<1x8x256xf32>,
    %c8 = arith.constant 8 : index
    %c0_32 = arith.constant 0 : index
    %40 = vector.load %arg9[%c8, %c0_32] : memref<72x256xf32, #tpu.memory_space<vmem>>, vector<8x256xf32>
    %cst_33 = arith.constant 0.000000e+00 : f32
    %41 = vector.broadcast %cst_33 : f32 to vector<8x16xf32>
    %42 = vector.extract_strided_slice %40 {offsets = [0, 0], sizes = [8, 240], strides = [1, 1]} : vector<8x256xf32> to vector<8x240xf32>
    %43 = tpu.concatenate %41, %42 in 1 : vector<8x16xf32>, vector<8x240xf32> -> vector<8x256xf32>
    %c0_34 = arith.constant 0 : index
    %c0_35 = arith.constant 0 : index
    %c0_36 = arith.constant 0 : index
    %44 = vector.load %arg8[%c0_34, %c0_35, %c0_36] : memref<1x8x256xf32, #tpu.memory_space<vmem>>, vector<1x8x256xf32>
    %45 = vector.shape_cast %44 : vector<1x8x256xf32> to vector<8x256xf32>
    %46 = arith.addf %45, %43 : vector<8x256xf32>
    %c0_37 = arith.constant 0 : index
    %c0_38 = arith.constant 0 : index
    %c0_39 = arith.constant 0 : index
    %47 = vector.load %arg8[%c0_37, %c0_38, %c0_39] : memref<1x8x256xf32, #tpu.memory_space<vmem>>, vector<1x8x256xf32>
    %48 = vector.shape_cast %47 : vector<1x8x256xf32> to vector<8x256xf32>
    %49 = vector.shape_cast %46 : vector<8x256xf32> to vector<1x8x256xf32>
    tpu.vector_store %arg8[%c0_37, %c0_38, %c0_39], %49 {strides = array<i32>} : memref<1x8x256xf32, #tpu.memory_space<vmem>>, vector<1x8x256xf32>,
    %c16 = arith.constant 16 : index
    %c0_40 = arith.constant 0 : index
    %50 = vector.load %arg9[%c16, %c0_40] : memref<72x256xf32, #tpu.memory_space<vmem>>, vector<8x256xf32>
    %cst_41 = arith.constant 0.000000e+00 : f32
    %51 = vector.broadcast %cst_41 : f32 to vector<8x15xf32>
    %52 = vector.extract_strided_slice %50 {offsets = [0, 0], sizes = [8, 241], strides = [1, 1]} : vector<8x256xf32> to vector<8x241xf32>
    %53 = tpu.concatenate %51, %52 in 1 : vector<8x15xf32>, vector<8x241xf32> -> vector<8x256xf32>
    %54 = vector.extract_strided_slice %22 {offsets = [1, 0], sizes = [1, 256], strides = [1, 1]} : vector<2x256xf32> to vector<1x256xf32>
    %55 = vector.broadcast %54 : vector<1x256xf32> to vector<8x256xf32>
    %56 = arith.mulf %53, %55 : vector<8x256xf32>
    %c0_42 = arith.constant 0 : index
    %c0_43 = arith.constant 0 : index
    %c0_44 = arith.constant 0 : index
    %57 = vector.load %arg8[%c0_42, %c0_43, %c0_44] : memref<1x8x256xf32, #tpu.memory_space<vmem>>, vector<1x8x256xf32>
    %58 = vector.shape_cast %57 : vector<1x8x256xf32> to vector<8x256xf32>
    %59 = arith.addf %58, %56 : vector<8x256xf32>
    %c0_45 = arith.constant 0 : index
    %c0_46 = arith.constant 0 : index
    %c0_47 = arith.constant 0 : index
    %60 = vector.load %arg8[%c0_45, %c0_46, %c0_47] : memref<1x8x256xf32, #tpu.memory_space<vmem>>, vector<1x8x256xf32>
    %61 = vector.shape_cast %60 : vector<1x8x256xf32> to vector<8x256xf32>
    %62 = vector.shape_cast %59 : vector<8x256xf32> to vector<1x8x256xf32>
    tpu.vector_store %arg8[%c0_45, %c0_46, %c0_47], %62 {strides = array<i32>} : memref<1x8x256xf32, #tpu.memory_space<vmem>>, vector<1x8x256xf32>,
    %c24 = arith.constant 24 : index
    %c0_48 = arith.constant 0 : index
    %63 = vector.load %arg9[%c24, %c0_48] : memref<72x256xf32, #tpu.memory_space<vmem>>, vector<8x256xf32>
    %cst_49 = arith.constant 0.000000e+00 : f32
    %64 = vector.broadcast %cst_49 : f32 to vector<8x1xf32>
    %65 = vector.extract_strided_slice %63 {offsets = [0, 0], sizes = [8, 255], strides = [1, 1]} : vector<8x256xf32> to vector<8x255xf32>
    %66 = tpu.concatenate %64, %65 in 1 : vector<8x1xf32>, vector<8x255xf32> -> vector<8x256xf32>
    %67 = vector.extract_strided_slice %22 {offsets = [0, 0], sizes = [1, 256], strides = [1, 1]} : vector<2x256xf32> to vector<1x256xf32>
    %68 = vector.broadcast %67 : vector<1x256xf32> to vector<8x256xf32>
    %69 = arith.mulf %66, %68 : vector<8x256xf32>
    %c0_50 = arith.constant 0 : index
    %c0_51 = arith.constant 0 : index
    %c0_52 = arith.constant 0 : index
    %70 = vector.load %arg8[%c0_50, %c0_51, %c0_52] : memref<1x8x256xf32, #tpu.memory_space<vmem>>, vector<1x8x256xf32>
    %71 = vector.shape_cast %70 : vector<1x8x256xf32> to vector<8x256xf32>
    %72 = arith.addf %71, %69 : vector<8x256xf32>
    %c0_53 = arith.constant 0 : index
    %c0_54 = arith.constant 0 : index
    %c0_55 = arith.constant 0 : index
    %73 = vector.load %arg8[%c0_53, %c0_54, %c0_55] : memref<1x8x256xf32, #tpu.memory_space<vmem>>, vector<1x8x256xf32>
    %74 = vector.shape_cast %73 : vector<1x8x256xf32> to vector<8x256xf32>
    %75 = vector.shape_cast %72 : vector<8x256xf32> to vector<1x8x256xf32>
    tpu.vector_store %arg8[%c0_53, %c0_54, %c0_55], %75 {strides = array<i32>} : memref<1x8x256xf32, #tpu.memory_space<vmem>>, vector<1x8x256xf32>,
    %c40 = arith.constant 40 : index
    %c0_56 = arith.constant 0 : index
    %76 = vector.load %arg9[%c40, %c0_56] : memref<72x256xf32, #tpu.memory_space<vmem>>, vector<8x256xf32>
    %cst_57 = arith.constant 0.000000e+00 : f32
    %77 = vector.broadcast %cst_57 : f32 to vector<8x1xf32>
    %78 = vector.extract_strided_slice %76 {offsets = [0, 1], sizes = [8, 255], strides = [1, 1]} : vector<8x256xf32> to vector<8x255xf32>
    %79 = tpu.concatenate %78, %77 in 1 : vector<8x255xf32>, vector<8x1xf32> -> vector<8x256xf32>
    %80 = vector.extract_strided_slice %22 {offsets = [1, 0], sizes = [1, 256], strides = [1, 1]} : vector<2x256xf32> to vector<1x256xf32>
    %81 = vector.broadcast %80 : vector<1x256xf32> to vector<8x256xf32>
    %82 = arith.mulf %79, %81 : vector<8x256xf32>
    %c0_58 = arith.constant 0 : index
    %c0_59 = arith.constant 0 : index
    %c0_60 = arith.constant 0 : index
    %83 = vector.load %arg8[%c0_58, %c0_59, %c0_60] : memref<1x8x256xf32, #tpu.memory_space<vmem>>, vector<1x8x256xf32>
    %84 = vector.shape_cast %83 : vector<1x8x256xf32> to vector<8x256xf32>
    %85 = arith.addf %84, %82 : vector<8x256xf32>
    %c0_61 = arith.constant 0 : index
    %c0_62 = arith.constant 0 : index
    %c0_63 = arith.constant 0 : index
    %86 = vector.load %arg8[%c0_61, %c0_62, %c0_63] : memref<1x8x256xf32, #tpu.memory_space<vmem>>, vector<1x8x256xf32>
    %87 = vector.shape_cast %86 : vector<1x8x256xf32> to vector<8x256xf32>
    %88 = vector.shape_cast %85 : vector<8x256xf32> to vector<1x8x256xf32>
    tpu.vector_store %arg8[%c0_61, %c0_62, %c0_63], %88 {strides = array<i32>} : memref<1x8x256xf32, #tpu.memory_space<vmem>>, vector<1x8x256xf32>,
    %c48 = arith.constant 48 : index
    %c0_64 = arith.constant 0 : index
    %89 = vector.load %arg9[%c48, %c0_64] : memref<72x256xf32, #tpu.memory_space<vmem>>, vector<8x256xf32>
    %cst_65 = arith.constant 0.000000e+00 : f32
    %90 = vector.broadcast %cst_65 : f32 to vector<8x15xf32>
    %91 = vector.extract_strided_slice %89 {offsets = [0, 15], sizes = [8, 241], strides = [1, 1]} : vector<8x256xf32> to vector<8x241xf32>
    %92 = tpu.concatenate %91, %90 in 1 : vector<8x241xf32>, vector<8x15xf32> -> vector<8x256xf32>
    %93 = vector.extract_strided_slice %22 {offsets = [0, 0], sizes = [1, 256], strides = [1, 1]} : vector<2x256xf32> to vector<1x256xf32>
    %94 = vector.broadcast %93 : vector<1x256xf32> to vector<8x256xf32>
    %95 = arith.mulf %92, %94 : vector<8x256xf32>
    %c0_66 = arith.constant 0 : index
    %c0_67 = arith.constant 0 : index
    %c0_68 = arith.constant 0 : index
    %96 = vector.load %arg8[%c0_66, %c0_67, %c0_68] : memref<1x8x256xf32, #tpu.memory_space<vmem>>, vector<1x8x256xf32>
    %97 = vector.shape_cast %96 : vector<1x8x256xf32> to vector<8x256xf32>
    %98 = arith.addf %97, %95 : vector<8x256xf32>
    %c0_69 = arith.constant 0 : index
    %c0_70 = arith.constant 0 : index
    %c0_71 = arith.constant 0 : index
    %99 = vector.load %arg8[%c0_69, %c0_70, %c0_71] : memref<1x8x256xf32, #tpu.memory_space<vmem>>, vector<1x8x256xf32>
    %100 = vector.shape_cast %99 : vector<1x8x256xf32> to vector<8x256xf32>
    %101 = vector.shape_cast %98 : vector<8x256xf32> to vector<1x8x256xf32>
    tpu.vector_store %arg8[%c0_69, %c0_70, %c0_71], %101 {strides = array<i32>} : memref<1x8x256xf32, #tpu.memory_space<vmem>>, vector<1x8x256xf32>,
    %c56 = arith.constant 56 : index
    %c0_72 = arith.constant 0 : index
    %102 = vector.load %arg9[%c56, %c0_72] : memref<72x256xf32, #tpu.memory_space<vmem>>, vector<8x256xf32>
    %cst_73 = arith.constant 0.000000e+00 : f32
    %103 = vector.broadcast %cst_73 : f32 to vector<8x16xf32>
    %104 = vector.extract_strided_slice %102 {offsets = [0, 16], sizes = [8, 240], strides = [1, 1]} : vector<8x256xf32> to vector<8x240xf32>
    %105 = tpu.concatenate %104, %103 in 1 : vector<8x240xf32>, vector<8x16xf32> -> vector<8x256xf32>
    %c0_74 = arith.constant 0 : index
    %c0_75 = arith.constant 0 : index
    %c0_76 = arith.constant 0 : index
    %106 = vector.load %arg8[%c0_74, %c0_75, %c0_76] : memref<1x8x256xf32, #tpu.memory_space<vmem>>, vector<1x8x256xf32>
    %107 = vector.shape_cast %106 : vector<1x8x256xf32> to vector<8x256xf32>
    %108 = arith.addf %107, %105 : vector<8x256xf32>
    %c0_77 = arith.constant 0 : index
    %c0_78 = arith.constant 0 : index
    %c0_79 = arith.constant 0 : index
    %109 = vector.load %arg8[%c0_77, %c0_78, %c0_79] : memref<1x8x256xf32, #tpu.memory_space<vmem>>, vector<1x8x256xf32>
    %110 = vector.shape_cast %109 : vector<1x8x256xf32> to vector<8x256xf32>
    %111 = vector.shape_cast %108 : vector<8x256xf32> to vector<1x8x256xf32>
    tpu.vector_store %arg8[%c0_77, %c0_78, %c0_79], %111 {strides = array<i32>} : memref<1x8x256xf32, #tpu.memory_space<vmem>>, vector<1x8x256xf32>,
    %c64 = arith.constant 64 : index
    %c0_80 = arith.constant 0 : index
    %112 = vector.load %arg9[%c64, %c0_80] : memref<72x256xf32, #tpu.memory_space<vmem>>, vector<8x256xf32>
    %cst_81 = arith.constant 0.000000e+00 : f32
    %113 = vector.broadcast %cst_81 : f32 to vector<8x17xf32>
    %114 = vector.extract_strided_slice %112 {offsets = [0, 17], sizes = [8, 239], strides = [1, 1]} : vector<8x256xf32> to vector<8x239xf32>
    %115 = tpu.concatenate %114, %113 in 1 : vector<8x239xf32>, vector<8x17xf32> -> vector<8x256xf32>
    %116 = vector.extract_strided_slice %22 {offsets = [1, 0], sizes = [1, 256], strides = [1, 1]} : vector<2x256xf32> to vector<1x256xf32>
    %117 = vector.broadcast %116 : vector<1x256xf32> to vector<8x256xf32>
    %118 = arith.mulf %115, %117 : vector<8x256xf32>
    %c0_82 = arith.constant 0 : index
    %c0_83 = arith.constant 0 : index
    %c0_84 = arith.constant 0 : index
    %119 = vector.load %arg8[%c0_82, %c0_83, %c0_84] : memref<1x8x256xf32, #tpu.memory_space<vmem>>, vector<1x8x256xf32>
    %120 = vector.shape_cast %119 : vector<1x8x256xf32> to vector<8x256xf32>
    %121 = arith.addf %120, %118 : vector<8x256xf32>
    %c0_85 = arith.constant 0 : index
    %c0_86 = arith.constant 0 : index
    %c0_87 = arith.constant 0 : index
    %122 = vector.load %arg8[%c0_85, %c0_86, %c0_87] : memref<1x8x256xf32, #tpu.memory_space<vmem>>, vector<1x8x256xf32>
    %123 = vector.shape_cast %122 : vector<1x8x256xf32> to vector<8x256xf32>
    %124 = vector.shape_cast %121 : vector<8x256xf32> to vector<1x8x256xf32>
    tpu.vector_store %arg8[%c0_85, %c0_86, %c0_87], %124 {strides = array<i32>} : memref<1x8x256xf32, #tpu.memory_space<vmem>>, vector<1x8x256xf32>,
    return
  }
  func.func @transform_0(%arg0: i32) -> (i32, i32, i32) {
    %c0_i32 = arith.constant 0 : i32
    %c0_i32_0 = arith.constant 0 : i32
    %c0_i32_1 = arith.constant 0 : i32
    return %arg0, %c0_i32, %c0_i32_0 : i32, i32, i32
  }
  func.func @transform_1(%arg0: i32) -> (i32, i32) {
    %c0_i32 = arith.constant 0 : i32
    %c0_i32_0 = arith.constant 0 : i32
    %c0_i32_1 = arith.constant 0 : i32
    return %c0_i32, %c0_i32_0 : i32, i32
  }
  func.func @transform_2(%arg0: i32) -> (i32, i32) {
    %c0_i32 = arith.constant 0 : i32
    %c0_i32_0 = arith.constant 0 : i32
    %c0_i32_1 = arith.constant 0 : i32
    return %c0_i32, %c0_i32_0 : i32, i32
  }
  func.func @transform_3(%arg0: i32) -> (i32, i32) {
    %c0_i32 = arith.constant 0 : i32
    %c0_i32_0 = arith.constant 0 : i32
    %c0_i32_1 = arith.constant 0 : i32
    return %c0_i32, %c0_i32_0 : i32, i32
  }
  func.func @transform_4(%arg0: i32) -> (i32, i32) {
    %c0_i32 = arith.constant 0 : i32
    %c0_i32_0 = arith.constant 0 : i32
    %c0_i32_1 = arith.constant 0 : i32
    return %c0_i32, %c0_i32_0 : i32, i32
  }
  func.func @transform_5(%arg0: i32) -> (i32, i32) {
    %c0_i32 = arith.constant 0 : i32
    %c0_i32_0 = arith.constant 0 : i32
    %c0_i32_1 = arith.constant 0 : i32
    return %c0_i32, %c0_i32_0 : i32, i32
  }
  func.func @transform_6(%arg0: i32) -> (i32, i32) {
    %c0_i32 = arith.constant 0 : i32
    %c0_i32_0 = arith.constant 0 : i32
    %c0_i32_1 = arith.constant 0 : i32
    return %c0_i32, %c0_i32_0 : i32, i32
  }
  func.func @transform_7(%arg0: i32) -> (i32, i32, i32) {
    %c0_i32 = arith.constant 0 : i32
    %c0_i32_0 = arith.constant 0 : i32
    %c0_i32_1 = arith.constant 0 : i32
    return %arg0, %c0_i32, %c0_i32_0 : i32, i32, i32
  }
}

</mosaic_0001>

<bundles_post_ra>
// kernel: tpu_custom_call.1
= control target key start
LH: loop header
LB: loop body
LE: loop exit
PB: predicated region body
PF: predicated region fallthrough
CT: control target
= control target key end

     0   :  { %12 = vsyncpa [#allocation4], 0  ;;  %s1225_s0 = inlined_call_operand.vmem [shape: f32[2,4,256], index: 0, kind: input, shape index: {}]   ;;  %s1226_s1 = inlined_call_operand.vmem [shape: f32[4,1], index: 1, kind: input, shape index: {}]   ;;  %s1227_s2 = inlined_call_operand.vmem [shape: f32[4,1], index: 2, kind: input, shape index: {}]   ;;  %s1228_s3 = inlined_call_operand.vmem [shape: bf16[32,4], index: 3, kind: input, shape index: {}]   ;;  %s1229_s4 = inlined_call_operand.vmem [shape: f32[32,1], index: 4, kind: input, shape index: {}]   ;;  %s1230_s5 = inlined_call_operand.vmem [shape: bf16[72,32], index: 5, kind: input, shape index: {}]   ;;  %s1231_s6 = inlined_call_operand.vmem [shape: f32[2,256], index: 6, kind: input, shape index: {}]   ;;  %s1232_s7 = inlined_call_operand.hbm [shape: f32[2,8,256], index: 7, kind: output, shape index: {}]  }
   0x1   :  { %14 = vsyncpa [#allocation4 + $0x1], 0  ;;  %s1063_s24 = smov 0   ;;  %s1065_s25 = smov 0  }
   0x2   :  { %s1067_s26 = smov 0   ;;  %s1069_s27 = smov 0  }
   0x3 LB: > { %s1084_s28 = sadd.s32 4294967295, %s1010_s27   ;;  %s857_s29 = sadd.s32 4294967294, %s1010_s27   ;;  %s1010_s27 = sphi %s1069_s27, %s1238_s27   ;;  %s1006_s26 = sphi %s1067_s26, %s1237_s26   ;;  %s1002_s25 = sphi %s1065_s25, %s1236_s25   ;;  %s998_s24 = sphi %s1063_s24, %s1235_s24  }
   0x4   : > { %s1088_s30 = sadd.s32 1, %s1010_s27   ;;  %s179_s8 = sadd.s32 1, %s1006_s26 }
   0x5   : > { %s176_s9 = ssub.s32 %s1010_s27, %s1088_s30  ;;  %p189_p0 = scmp.ne.s32.totalorder %s1006_s26, %s1002_s25 }
   0x6   : > { %p177_p1 = scmp.eq.s32.totalorder %s176_s9, 0  ;;  %p190_p2 = scmp.eq.s32.totalorder %s1084_s28, 1 }
   0x7   : > { %p195_p3 = scmp.ne.s32.totalorder %s1002_s25, %s998_s24  ;;  %p196_p4 = scmp.eq.s32.totalorder %s857_s29, 1 }
   0x8   : > { %s1099_s10 = scalar_select %p177_p1, %s1006_s26, %s179_s8  }
   0x9   : > { %p1101_p5 = por %p190_p2, %p189_p0  ;;  %p1105_p6 = por %p196_p4, %p195_p3 }
   0xa   : > { %p860_p7 = scmp.ge.s32.totalorder %s1010_s27, 1  ;;  %p240_p8 = scmp.lt.s32.totalorder %s1010_s27, 3 }
   0xc   : > { %p241_p9 = pnand %p860_p7, %p240_p8 }
   0xd   : > { %v279_v0 = vld [vmem:[%s1226_s1] sm:$0xf] (!%p241_p9)  ;;  %v1012_v1 = vmov (!%p241_p9), 0   ;;  %v319_v3 = vld [vmem:[%s1229_s4 + $0x10] sm:$0xff] (!%p241_p9)  ;;  %v318_v5 = vld [vmem:[%s1229_s4 + $0x8] sm:$0xff] (!%p241_p9)  ;;  %p272_p10 = scmp.lt.s32.totalorder (!%p241_p9), %s1084_s28, 1  ;;  %v287_v9 = vlaneseq (!%p241_p9) }
   0xe   : > { %244 = sbr.rel (%p241_p9) target bundleno = 769 (0x301), region = 48  ;;  %939 = vset.pattern.permute.xlu0 (!%p241_p9), %v1012_v1  ;;  %397 = vmatprep.mubr.bf16.mxu0 (!%p241_p9), %v1012_v1  ;;  %v293_v2 = vld [vmem:[%s1227_s2] sm:$0xf] (!%p241_p9)  ;;  %v320_v6 = vld [vmem:[%s1229_s4 + $0x18] sm:$0xff] (!%p241_p9)  ;;  %v1013_v7 = vmov (!%p241_p9), 839922192  }
   0xf   : > { %282 = vperm.xlu0 (!%p241_p9), %939, %v279_v0   ;;  %940 = vset.pattern.permute.xlu1 (!%p241_p9), %v1012_v1  ;;  %v317_v4 = vld [vmem:[%s1229_s4] sm:$0xff] (!%p241_p9)  ;;  %v285_v8 = vunpack.c.l.s4 (!%p241_p9), %v1013_v7  ;;  %v1135_v11 = vshrl.u32 (!%p241_p9), %v287_v9, 7  ;;  %vm358_vm0 = vcmask (!%p241_p9), 1041408   ;;  %vm351_vm1 = vcmask (!%p241_p9), 31744   ;;  %v942_v26 = vld [vmem:[%s1228_s3 + $0x8] sm:$0xff] (!%p241_p9)   ;;  %v945_v61 = vld [vmem:[%s1230_s5 + $0x10] sm:$0xff] (!%p241_p9)  }
  0x10   : > { %520 = vmatprep.mubr.bf16.mxu1 (!%p241_p9), %v1012_v1  ;;  %323 = vperm.xlu1 (!%p241_p9), %940, %v317_v4   ;;  %v941_v25 = vld [vmem:[%s1228_s3] sm:$0xff] (!%p241_p9)   ;;  %v944_v60 = vld [vmem:[%s1230_s5 + $0x8] sm:$0xff] (!%p241_p9)   ;;  %vm462_vm2 = vcmask (!%p241_p9), 261120   ;;  %v946_v62 = vld [vmem:[%s1230_s5 + $0x18] sm:$0xff] (!%p241_p9)   ;;  %s1014_s16 = smov (!%p241_p9), 17   ;;  %s1015_s17 = smov (!%p241_p9), 16  }
  0x11   : > { %v286_v10 = vunpack.c.0.s8 (!%p241_p9), %v285_v8  ;;  %v943_v59 = vld [vmem:[%s1230_s5] sm:$0xff] (!%p241_p9)   ;;  %s1016_s18 = smov (!%p241_p9), 15   ;;  %s1017_s19 = smov (!%p241_p9), 1   ;;  %vm590_vm3 = vcmask (!%p241_p9), 138240   ;;  %vm649_vm4 = vcmask (!%p241_p9), 121856   ;;  %vm630_vm5 = vcmask (!%p241_p9), 130048  }
  0x12   : > { %v947_v63 = vld [vmem:[%s1230_s5 + $0x20] ss:$0 sps:$4 sm:$0xff] (!%p241_p9)   ;;  %s1018_s20 = smov (!%p241_p9), 127   ;;  %s1019_s21 = smov (!%p241_p9), 113   ;;  %vm688_vm6 = vcmask (!%p241_p9), 7168   ;;  %vm709_vm7 = vcmask (!%p241_p9), 1039360  }
  0x13   : > { %296 = vperm.xlu0 (!%p241_p9), %939, %v293_v2   ;;  %v289_v12 = vsub.s32 (!%p241_p9), %v286_v10, %v1135_v11  ;;  %s1020_s22 = smov (!%p241_p9), 112   ;;  %s1021_s23 = smov (!%p241_p9), 111   ;;  %vm730_vm8 = vcmask (!%p241_p9), 924672   ;;  %vm751_vm9 = vcmask (!%p241_p9), 916480   ;;  %vm770_vm10 = vcmask (!%p241_p9), 908288  }
  0x14   : > { %328 = vperm.xlu1 (!%p241_p9), %940, %v318_v5   ;;  %s885_s14 = sshll.u32 (!%p241_p9), %s1084_s28, 8 }
  0x15   : > { %s273_s8 = scalar_select %p272_p10, %s1084_s28, 1 }
  0x17   : > { %333 = vperm.xlu0 %939, %v319_v3   ;;  %s884_s9 = sshll.u32 %s273_s8, 3 }
  0x18   : > { %338 = vperm.xlu1 %940, %v320_v6   ;;  %s276_s15 = scalar_lea.vmem %s1225_s0, %s884_s9  ;;  %s269_s9 = sand.u32 1, %s1002_s25  }
  0x19   : > { %v278_v15 = vld [vmem:[%s276_s15] sm:$0xff]  ;;  %s861_s13 = sshll.u32 %s269_s9, 4  ;;  %s784_s28 = scalar_lea.sflag [#allocation4], %s269_s9 }
  0x1a   : > { %s271_s15 = scalar_lea.vmem [#allocation3], %s861_s13 }
  0x8e   : > { %v283_v13 = vpop.permute.xlu0 %282 }
  0x8f   : > { %v290_v14 = vrot.slane %v283_v13, %v289_v12  ;;  %v324_v27 = vpop.permute.xlu1 %323 }
  0x91   : > { %v292_v17 = vmul.f32 %v290_v14, %v278_v15 }
  0x92   : > { %v297_v16 = vpop.permute.xlu0 %296 }
  0x93   : > { %v304_v18 = vrot.slane %v297_v16, %v289_v12  ;;  %v329_v31 = vpop.permute.xlu1 %328 }
  0x95   : > { %v306_v19 = vadd.f32 %v304_v18, %v292_v17 }
  0x96   : > { %v334_v42 = vpop.permute.xlu0 %333 }
  0x97   : > { %v307_v20 = vmax.f32 %v306_v19, 0.0  ;;  %v339_v47 = vpop.permute.xlu1 %338 }
  0x99   : > { %v313_v21 = vcombine.high %v307_v20, %v307_v20  ;;  %v315_v22 = vpack.c.bf16 %v307_v20, %v307_v20 }
  0x9b   : > { %v316_v23 = vpack.c.bf16 %v313_v21, %v313_v21  ;;  %v360_v24 = vsel %vm358_vm0, %v315_v22, 0  ;;  %v598_v21 = vsub.s32 0, %v1135_v11  ;;  %v602_v22 = vsub.s32 2, %v1135_v11 }
  0x9d   : > { %866 = vmatprep.subr.msk.bf16.mxu0 %vm358_vm0, %v316_v23  ;;  %v577_v23 = vld [vmem:[%s1231_s6] sm:$0xf] }
  0x9e   : > { %366 = vmatpush1.bf16.msra.mxu0 %v360_v24 }
  0xa1   : > { %867 = vmatmul.mubr.msk.bf16.vlgmr.msra.gmra.mrb[0].mxu0 %vm351_vm1, %v941_v25 }
  0xa2   : > { %407 = vmatprep.mubr.bf16.mxu0 %v1012_v1 }
  0xa9   : > { %868 = vmatmul.mubr.msk.bf16.gmra.mrb[4].mxu0 %vm351_vm1, %v942_v26  ;;  %v599_v26 = vrot.slane %v577_v23, %v598_v21 }
  0xaa   : > { %510 = vmatprep.mubr.bf16.mxu0 %v1012_v1 }
 0x174   : > { %v399_v28 = vpop.f32.mrb[0].mxu0 }
 0x175   : > { %v400_v29 = vadd.f32 %v399_v28, %v324_v27  ;;  %v401_v30 = vpop.f32.mrb[1].mxu0 }
 0x176   : > { %v402_v32 = vadd.f32 %v401_v30, %v324_v27  ;;  %v403_v33 = vpop.f32.mrb[2].mxu0  ;;  %v603_v27 = vrot.slane %v577_v23, %v602_v22  ;;  %v656_v30 = vsub.s32 1, %v1135_v11 }
 0x177   : > { %v404_v34 = vadd.f32 %v403_v33, %v329_v31  ;;  %v405_v35 = vpop.f32.mrb[3].mxu0  ;;  %v418_v37 = vmax.f32 %v400_v29, 0.0 }
 0x178   : > { %v406_v36 = vadd.f32 %v405_v35, %v329_v31  ;;  %v419_v39 = vmax.f32 %v402_v32, 0.0  ;;  %v660_v31 = vsub.s32 3, %v1135_v11  ;;  %v609_v32 = vrot.slane %v599_v26, %v598_v21 }
 0x179   : > { %v420_v38 = vmax.f32 %v404_v34, 0.0  ;;  %v613_v33 = vrot.slane %v603_v27, %v598_v21 }
 0x17a   : > { %v421_v40 = vmax.f32 %v406_v36, 0.0 }
 0x17b   : > { %v435_v41 = vpack.c.bf16 %v420_v38, %v418_v37  ;;  %v657_v37 = vrot.slane %v577_v23, %v656_v30  ;;  %v661_v38 = vrot.slane %v577_v23, %v660_v31 }
 0x17c   : > { %v436_v43 = vpack.c.bf16 %v421_v40, %v419_v39  ;;  %v409_v44 = vpop.f32.mrb[4].mxu0 }
 0x17d   : > { %v410_v45 = vadd.f32 %v409_v44, %v334_v42  ;;  %v411_v46 = vpop.f32.mrb[5].mxu0  ;;  %v671_v44 = vrot.slane %v661_v38, %v656_v30 }
 0x17e   : > { %v412_v48 = vadd.f32 %v411_v46, %v334_v42  ;;  %v413_v49 = vpop.f32.mrb[6].mxu0  ;;  %478 = vmatprep.subr.bf16.mxu0 %v436_v43  ;;  %886 = vmatprep.subr.bf16.mxu1 %v436_v43  ;;  %v667_v43 = vrot.slane %v657_v37, %v656_v30 }
 0x17f   : > { %v414_v50 = vadd.f32 %v413_v49, %v339_v47  ;;  %v415_v51 = vpop.f32.mrb[7].mxu0  ;;  %479 = vmatpush1.bf16.msra.mxu0 %v435_v41  ;;  %888 = vmatpush1.bf16.msra.mxu1 %v435_v41  ;;  %v422_v53 = vmax.f32 %v410_v45, 0.0 }
 0x180   : > { %v416_v52 = vadd.f32 %v415_v51, %v339_v47  ;;  %v423_v55 = vmax.f32 %v412_v48, 0.0 }
 0x181   : > { %v424_v54 = vmax.f32 %v414_v50, 0.0 }
 0x182   : > { %v425_v56 = vmax.f32 %v416_v52, 0.0 }
 0x183   : > { %v437_v57 = vpack.c.bf16 %v424_v54, %v422_v53 }
 0x184   : > { %v438_v58 = vpack.c.bf16 %v425_v56, %v423_v55 }
 0x186   : > { %480 = vmatprep.subr.bf16.mxu0 %v438_v58  ;;  %887 = vmatprep.subr.bf16.mxu1 %v438_v58 }
 0x187   : > { %481 = vmatpush1.bf16.msra.mxu0 %v437_v57  ;;  %889 = vmatpush1.bf16.msra.mxu1 %v437_v57 }
 0x18a   : > { %874 = vmatmul.mubr.msk.bf16.vlgmr.msra.gmra.mrb[8].mxu0 %vm462_vm2, %v943_v59  ;;  %875 = vmatmul.mubr.msk.bf16.vlgmr.msra.gmra.mrb[0].mxu1 %vm462_vm2, %v944_v60 }
 0x18b   : > { %530 = vmatprep.mubr.bf16.mxu1 %v1012_v1 }
 0x192   : > { %876 = vmatmul.mubr.msk.bf16.gmra.mrb[4].mxu1 %vm462_vm2, %v945_v61 }
 0x193   : > { %540 = vmatprep.mubr.bf16.mxu1 %v1012_v1 }
 0x19a   : > { %877 = vmatmul.mubr.msk.bf16.gmra.mrb[8].mxu1 %vm462_vm2, %v946_v62 }
 0x19b   : > { %550 = vmatprep.mubr.bf16.mxu1 %v1012_v1 }
 0x1a2   : > { %878 = vmatmul.mubr.msk.bf16.gmra.mrb[12].mxu1 %vm462_vm2, %v947_v63 }
 0x25d   : > { %v512_v0 = vpop.f32.mrb[8].mxu0  ;;  %v522_v2 = vpop.f32.mrb[0].mxu1 }
 0x25e   : > { %586 = vrot.lane.b32.xlu0 %v512_v0, %s1014_s16  ;;  %v514_v3 = vpop.f32.mrb[9].mxu0  ;;  %v524_v4 = vpop.f32.mrb[1].mxu1 }
 0x25f   : > { %588 = vrot.lane.b32.xlu1 %v514_v3, %s1014_s16  ;;  %v516_v5 = vpop.f32.mrb[10].mxu0  ;;  %v526_v6 = vpop.f32.mrb[2].mxu1  ;;  %s798_s16 = sshll.u32 %s271_s15, 4  ;;  %s1183_s16 = int_to_ptr.vmem [resolvable:$true] %s798_s16 }
 0x260   : > { %v518_v7 = vpop.f32.mrb[11].mxu0  ;;  %v528_v8 = vpop.f32.mrb[3].mxu1 }
 0x262   : > { %626 = vrot.lane.b32.xlu0 %v516_v5, %s1015_s17 }
 0x263   : > { %628 = vrot.lane.b32.xlu1 %v518_v7, %s1015_s17 }
 0x265   : > { %v532_v1 = vpop.f32.mrb[4].mxu1 }
 0x266   : > { %645 = vrot.lane.b32.xlu0 %v522_v2, %s1016_s18  ;;  %v534_v9 = vpop.f32.mrb[5].mxu1 }
 0x267   : > { %647 = vrot.lane.b32.xlu1 %v524_v4, %s1016_s18  ;;  %v536_v10 = vpop.f32.mrb[6].mxu1 }
 0x268   : > { %v538_v12 = vpop.f32.mrb[7].mxu1 }
 0x26a   : > { %684 = vrot.lane.b32.xlu0 %v526_v6, %s1017_s19 }
 0x26b   : > { %686 = vrot.lane.b32.xlu1 %v528_v8, %s1017_s19  ;;  %s1181_s19 = scalar_lea.hbm %s1232_s7, %s885_s14 }
 0x26d   : > { %v542_v13 = vpop.f32.mrb[8].mxu1 }
 0x26e   : > { %705 = vrot.lane.b32.xlu0 %v536_v10, %s1018_s20  ;;  %v544_v14 = vpop.f32.mrb[9].mxu1 }
 0x26f   : > { %707 = vrot.lane.b32.xlu1 %v538_v12, %s1018_s20  ;;  %v546_v15 = vpop.f32.mrb[10].mxu1  ;;  %s948_s20 = scalar_lea.vmem %s1183_s16, 256 }
 0x270   : > { %v548_v16 = vpop.f32.mrb[11].mxu1  ;;  %p949_p11 = scmp.ne.s32.totalorder %s1183_s16, %s948_s20 }
 0x272   : > { %726 = vrot.lane.b32.xlu0 %v542_v13, %s1019_s21  ;;  %p950_p12 = pnand %p949_p11, %p1101_p5 }
 0x273   : > { %728 = vrot.lane.b32.xlu1 %v544_v14, %s1019_s21  ;;  %s1022_s21 = smov [#allocation3]  }
 0x274   : > { %p951_p13 = pneg %p950_p12 }
 0x275   : > { %v552_v17 = vpop.f32.mrb[12].mxu1 }
 0x276   : > { %747 = vrot.lane.b32.xlu0 %v546_v15, %s1020_s22  ;;  %v554_v18 = vpop.f32.mrb[13].mxu1 }
 0x277   : > { %749 = vrot.lane.b32.xlu1 %v548_v16, %s1020_s22  ;;  %v556_v19 = vpop.f32.mrb[14].mxu1  ;;  %s952_s22 = sshll.u32 %s1022_s21, 4  ;;  %s953_s22 = int_to_ptr.vmem [resolvable:$false] %s952_s22 }
 0x278   : > { %v557_v20 = vpop.f32.mrb[15].mxu1  ;;  %p955_p0 = scmp.lt.s32.totalorder %s1183_s16, %s953_s22 }
 0x27a   : > { %766 = vrot.lane.b32.xlu0 %v552_v17, %s1021_s23 }
 0x27b   : > { %768 = vrot.lane.b32.xlu1 %v554_v18, %s1021_s23  ;;  %s954_s23 = scalar_lea.vmem %s953_s22, 512 }
 0x27c   : > { %p956_p1 = scmp.lt.s32.totalorder %s954_s23, %s948_s20 }
 0x27e   : > { %p957_p2 = por %p956_p1, %p955_p0 }
 0x280   : > { %p958_p3 = pnand %p957_p2, %p951_p13 }
 0x2d0   : > { %v587_v24 = vpop.permute.xlu0 %586 }
 0x2d1   : > { %v589_v25 = vpop.permute.xlu1 %588  ;;  %v594_v34 = vsel %vm590_vm3, 0.0, %v587_v24 }
 0x2d2   : > { %v591_v35 = vsel %vm590_vm3, %v587_v24, %v589_v25  ;;  %v614_v40 = vmul.f32 %v609_v32, %v594_v34 }
 0x2d3   : > { %v615_v41 = vmul.f32 %v613_v33, %v591_v35 }
 0x2d4   : > { %v627_v28 = vpop.permute.xlu0 %626  ;;  %v618_v11 = vadd.f32 %v614_v40, %v532_v1 }
 0x2d5   : > { %v629_v29 = vpop.permute.xlu1 %628  ;;  %v619_v48 = vadd.f32 %v615_v41, %v534_v9  ;;  %v634_v49 = vsel %vm630_vm5, 0.0, %v627_v28 }
 0x2d6   : > { %v631_v50 = vsel %vm630_vm5, %v627_v28, %v629_v29  ;;  %v637_v59 = vadd.f32 %v634_v49, %v618_v11 }
 0x2d7   : > { %v638_v60 = vadd.f32 %v631_v50, %v619_v48 }
 0x2d8   : > { %v646_v36 = vpop.permute.xlu0 %645 }
 0x2d9   : > { %v648_v39 = vpop.permute.xlu1 %647  ;;  %v653_v46 = vsel %vm649_vm4, 0.0, %v646_v36 }
 0x2da   : > { %v650_v47 = vsel %vm649_vm4, %v646_v36, %v648_v39  ;;  %v672_v54 = vmul.f32 %v667_v43, %v653_v46 }
 0x2db   : > { %v673_v55 = vmul.f32 %v671_v44, %v650_v47 }
 0x2dc   : > { %v685_v42 = vpop.permute.xlu0 %684  ;;  %v676_v0 = vadd.f32 %v672_v54, %v637_v59 }
 0x2dd   : > { %v687_v45 = vpop.permute.xlu1 %686  ;;  %v692_v51 = vsel %vm688_vm6, 0.0, %v685_v42  ;;  %v677_v2 = vadd.f32 %v673_v55, %v638_v60 }
 0x2de   : > { %v689_v52 = vsel %vm688_vm6, %v685_v42, %v687_v45  ;;  %v693_v61 = vmul.f32 %v692_v51, %v609_v32 }
 0x2df   : > { %v694_v62 = vmul.f32 %v689_v52, %v613_v33 }
 0x2e0   : > { %v706_v53 = vpop.permute.xlu0 %705  ;;  %v697_v8 = vadd.f32 %v693_v61, %v676_v0 }
 0x2e1   : > { %v708_v56 = vpop.permute.xlu1 %707  ;;  %v698_v1 = vadd.f32 %v694_v62, %v677_v2 }
 0x2e2   : > { %v710_v57 = vsel %vm709_vm7, %v706_v53, %v708_v56  ;;  %v713_v58 = vsel %vm709_vm7, %v708_v56, 0.0 }
 0x2e3   : > { %v714_v3 = vmul.f32 %v710_v57, %v667_v43  ;;  %v715_v4 = vmul.f32 %v713_v58, %v671_v44 }
 0x2e4   : > { %v727_v63 = vpop.permute.xlu0 %726 }
 0x2e5   : > { %v729_v5 = vpop.permute.xlu1 %728  ;;  %v718_v13 = vadd.f32 %v714_v3, %v697_v8  ;;  %v719_v14 = vadd.f32 %v715_v4, %v698_v1 }
 0x2e6   : > { %v731_v6 = vsel %vm730_vm8, %v727_v63, %v729_v5  ;;  %v734_v7 = vsel %vm730_vm8, %v729_v5, 0.0 }
 0x2e7   : > { %v735_v9 = vmul.f32 %v731_v6, %v609_v32  ;;  %v736_v10 = vmul.f32 %v734_v7, %v613_v33 }
 0x2e8   : > { %v748_v12 = vpop.permute.xlu0 %747 }
 0x2e9   : > { %v750_v15 = vpop.permute.xlu1 %749  ;;  %v739_v16 = vadd.f32 %v735_v9, %v718_v13  ;;  %v740_v17 = vadd.f32 %v736_v10, %v719_v14 }
 0x2ea   : > { %v752_v18 = vsel %vm751_vm9, %v748_v12, %v750_v15  ;;  %v755_v19 = vsel %vm751_vm9, %v750_v15, 0.0 }
 0x2eb   : > { %v758_v24 = vadd.f32 %v752_v18, %v739_v16  ;;  %v759_v25 = vadd.f32 %v755_v19, %v740_v17 }
 0x2ec   : > { %v767_v20 = vpop.permute.xlu0 %766 }
 0x2ed   : > { %v769_v21 = vpop.permute.xlu1 %768 }
 0x2ee   : > { %v771_v22 = vsel %vm770_vm10, %v767_v20, %v769_v21  ;;  %v774_v23 = vsel %vm770_vm10, %v769_v21, 0.0 }
 0x2ef   : > { %v775_v26 = vmul.f32 %v771_v22, %v667_v43  ;;  %v776_v27 = vmul.f32 %v774_v23, %v671_v44 }
 0x2f1   : > { %v779_v28 = vadd.f32 %v775_v26, %v758_v24  ;;  %v780_v29 = vadd.f32 %v776_v27, %v759_v25 }
 0x2f3   : > { %781 = vst [vmem:[%s271_s15] sm:$0xff] %v779_v28  ;;  %782 = vst [vmem:[%s271_s15 + $0x8] sm:$0xff] %v780_v29 }
 0x2f4   : > { %961 = shalt.err (!%p958_p3)
}
 0x2f5   : > { %s962_s29 = scalar_lea.hbm %s1181_s19, 256  ;;  %s966_s13 = scalar_lea.hbm %s1232_s7, 512 }
 0x2f6   : > { %p963_p4 = scmp.ne.s32.totalorder %s1181_s19, %s962_s29  ;;  %p967_p9 = scmp.lt.u32.totalorder %s1181_s19, %s1232_s7 }
 0x2f7   : > { %p968_p10 = scmp.lt.u32.totalorder %s966_s13, %s962_s29  ;;  %p970_p12 = scmp.lt.u32.totalorder %s962_s29, %s1181_s19 }
 0x2f8   : > { %p964_p7 = pnand %p963_p4, %p1101_p5 }
 0x2f9   : > { %p969_p11 = por %p968_p10, %p967_p9 }
 0x2fa   : > { %p965_p8 = pneg %p964_p7 }
 0x2fb   : > { %p971_p13 = por %p970_p12, %p969_p11 }
 0x2fd   : > { %p972_p0 = pnand %p971_p13, %p965_p8 }
 0x2ff   : > { %975 = shalt.err (!%p972_p0)
}
 0x300   : > { %890 = dma.vmem_to_hbm [thread:$0]  (%p1101_p5), %s1183_s16, 256, %s1181_s19, %s784_s28  }
 0x301 PF: > { %p896_p1 = scmp.ge.s32.totalorder %s1010_s27, 2  ;;  %s810_s17 = sand.u32 1, %s998_s24  }
 0x302   : > { %s811_s18 = scalar_lea.sflag [#allocation4], %s810_s17 }
 0x303   : > { %p893_p2 = pnand %p896_p1, %p1105_p6 }
 0x305   : > { %993 = dma.done.wait (!%p893_p2), %s811_s18, 256  }
 0x306   : > { %995 = vsyncadd (!%p893_p2), %s811_s18, 4294967040  ;;  %p17_p3 = scmp.ge.s32.totalorder %s1088_s30, 4   ;;  %s1235_s24 = smov %s1002_s25 }
 0x307   : > { %s1236_s25 = smov %s1006_s26  ;;  %s1237_s26 = smov %s1099_s10 }
 0x308   : > { %s1238_s27 = smov %s1088_s30  ;;  %19 = sbr.rel (!%p17_p3) target bundleno = 3 (0x3), region = 83 }
 0x30f   :  { %816 = vsyncpa [#allocation4], 1 }
 0x310   :  { %818 = vsyncpa [#allocation4 + $0x1], 1 }

</bundles_post_ra>
